<compile_context>
chip_gen: v7x
topology: tpu7x:2x2x1
jax: 0.10.0
libtpu: 0.0.40
codegen_flags: <defaults>
</compile_context>

<pallas_src>
import functools

import jax
import jax.numpy as jnp
from jax import lax
from jax.experimental import pallas as pl
from jax.experimental.pallas import tpu as pltpu


def _round_up(a, b):
    return (a + b - 1) // b * b


def _cdiv(a, b):
    return -(-a // b)


def _vq_cosine_kernel(x_ref, cb_ref, cbt_ref, o_ref, d_ref, *, n_slices):
    # x_ref / o_ref: (C, TS) lane-dense token tile (tokens along lanes).
    # cb_ref: (K, C) codebook; cbt_ref: (C, K) pre-transposed codebook (both resident).
    # d_ref: (K, TS) VMEM scratch holding the cosine logits for the whole tile.
    K = cb_ref.shape[0]

    # Wide logits matmul over the full lane tile: logits^T = codebook @ x -> (K, TS).
    # (Normalization of x omitted: positive per-token scale cannot change the argmax.)
    d_ref[...] = lax.dot_general(
        cb_ref[...], x_ref[...].astype(jnp.float32),
        (((1,), (0,)), ((), ())),
        preferred_element_type=jnp.float32,
        precision=lax.Precision.HIGHEST)

    # Hoisted, int32 codebook-index iota (JAX does not CSE broadcast_in_dim).
    ids = lax.broadcasted_iota(jnp.int32, (K, 128), 0)

    def body(t, carry):
        off = pl.multiple_of(t * 128, 128)
        d = d_ref[:, pl.ds(off, 128)]                         # (K, 128) f32
        # First-occurrence argmax over the codebook axis (int32 compares).
        m = jnp.max(d, axis=0, keepdims=True)                 # (1, 128)
        cand = jnp.where(d == m, ids, K)                      # int32
        idx = jnp.min(cand, axis=0, keepdims=True)            # (1, 128) int32
        onehot = jnp.where(ids == idx, jnp.float32(1.0), jnp.float32(0.0))  # (K, 128)
        # Codeword gather as an MXU matmul: q^T = codebook^T @ onehot -> (C, 128).
        q = lax.dot_general(
            cbt_ref[...], onehot,
            (((1,), (0,)), ((), ())),
            preferred_element_type=jnp.float32,
            precision=lax.Precision.HIGHEST)
        o_ref[:, pl.ds(off, 128)] = q.astype(o_ref.dtype)
        return carry

    lax.fori_loop(0, n_slices, body, None, unroll=min(2, n_slices))


def vq_cosine(x_nchw, codebook, *, spatial_tile=8192, min_grid=4):
    """VQCosine forward. x_nchw: (B, C, H, W) f32, codebook: (K, C) f32 -> (B, C, H, W)."""
    B, C, H, W = x_nchw.shape
    K, Cc = codebook.shape
    assert Cc == C
    HW = H * W

    # Adaptive lane tile: as large as possible (amortize per-grid-step overhead) while
    # keeping at least `min_grid` grid points so the v7x 2-TensorCore megacore has work.
    ts = min(spatial_tile, _round_up(HW, 128))
    while ts > 128 and B * _cdiv(HW, ts) < min_grid:
        ts = _round_up(_cdiv(ts, 2), 128)
    n_tiles = _cdiv(HW, ts)

    xf = x_nchw.reshape(B, C, HW)        # free view of NCHW: tokens on lanes
    cb_t = codebook.T                    # hoisted out of the kernel

    kernel = functools.partial(_vq_cosine_kernel, n_slices=ts // 128)
    out = pl.pallas_call(
        kernel,
        out_shape=jax.ShapeDtypeStruct((B, C, HW), jnp.float32),
        grid=(B, n_tiles),
        in_specs=[
            pl.BlockSpec((None, C, ts), lambda b, s: (b, 0, s)),   # lane-dense token tile
            pl.BlockSpec((K, C), lambda b, s: (0, 0)),             # codebook (resident)
            pl.BlockSpec((C, K), lambda b, s: (0, 0)),             # codebook^T (resident)
        ],
        out_specs=pl.BlockSpec((None, C, ts), lambda b, s: (b, 0, s)),
        scratch_shapes=[pltpu.VMEM((K, ts), jnp.float32)],
        compiler_params=pltpu.CompilerParams(
            dimension_semantics=("parallel", "parallel")),
    )(xf, codebook, cb_t)

    return out.reshape(B, C, H, W)       # free view back to NCHW


def _reference(x_nchw, codebook):
    B, C, H, W = x_nchw.shape
    norm = jnp.sqrt(jnp.sum(x_nchw * x_nchw, axis=1, keepdims=True))
    xn = x_nchw / jnp.maximum(norm, 1e-12)
    z = jnp.transpose(xn, (0, 2, 3, 1)).reshape(-1, C)
    d = jnp.matmul(z, codebook.T, precision=lax.Precision.HIGHEST)
    q = codebook[jnp.argmax(d, axis=1)]
    return q.reshape(B, H, W, C).transpose(0, 3, 1, 2)


if __name__ == "__main__":
    # Small deterministic setup consistent with the module:
    #   feature_size (channels) = 32, codebook_size = 64.
    B, C, H, W = 2, 32, 16, 16
    K = 64

    key = jax.random.PRNGKey(0)
    kx, kc = jax.random.split(key)
    x = jax.random.normal(kx, (B, C, H, W), dtype=jnp.float32)
    codebook = jax.random.normal(kc, (K, C), dtype=jnp.float32)   # torch.randn init

    q = jax.block_until_ready(vq_cosine(x, codebook))
    assert q.shape == (B, C, H, W)

    # Correctness: exact match against the argmax reference, with a tie-tolerant
    # fallback (argmax is only defined up to fp near-ties): every returned token must
    # be an actual codebook row whose cosine score matches the best achievable score.
    q_ref = _reference(x, codebook)
    ok_exact = bool(jnp.allclose(q, q_ref, atol=1e-4, rtol=1e-4))

    q_tok = q.transpose(0, 2, 3, 1).reshape(-1, C)
    z = jnp.transpose(
        x / jnp.maximum(jnp.sqrt(jnp.sum(x * x, axis=1, keepdims=True)), 1e-12),
        (0, 2, 3, 1)).reshape(-1, C)
    row_err = jnp.min(
        jnp.max(jnp.abs(q_tok[:, None, :] - codebook[None, :, :]), axis=-1), axis=-1)
    best = jnp.max(jnp.matmul(z, codebook.T, precision=lax.Precision.HIGHEST), axis=1)
    score = jnp.sum(z * q_tok, axis=1)
    ok_ties = bool(jnp.max(row_err) < 1e-3) and bool(jnp.max(best - score) < 5e-3)

    assert ok_exact or ok_ties, float(jnp.max(jnp.abs(q - q_ref)))
    print("KERNEL_OK")
</pallas_src>

<mosaic_0001>
module attributes {stable_mosaic.version = 11 : i64} {
  func.func @_vq_cosine_kernel(%arg0: i32, %arg1: i32, %arg2: memref<1x32x128xf32, #tpu.memory_space<vmem>>, %arg3: memref<64x32xf32, #tpu.memory_space<vmem>>, %arg4: memref<32x64xf32, #tpu.memory_space<vmem>>, %arg5: memref<1x32x128xf32, #tpu.memory_space<vmem>>, %arg6: memref<64x128xf32, #tpu.memory_space<vmem>>) attributes {dimension_semantics = [#tpu.dimension_semantics<parallel>, #tpu.dimension_semantics<parallel>], iteration_bounds = array<i64: 2, 2>, scalar_prefetch = 0 : i64, scratch_operands = 1 : i64, tpu.core_type = #tpu.core_type<tc>, window_params = [{transform_indices = @transform_0, window_bounds = array<i64: 1, 32, 128>}, {pipeline_mode = #tpu.pipeline_mode<synchronous>, transform_indices = @transform_1, window_bounds = array<i64: 64, 32>}, {pipeline_mode = #tpu.pipeline_mode<synchronous>, transform_indices = @transform_2, window_bounds = array<i64: 32, 64>}, {transform_indices = @transform_3, window_bounds = array<i64: 1, 32, 128>}]} {
    %c0 = arith.constant 0 : index
    %c0_0 = arith.constant 0 : index
    %0 = vector.load %arg3[%c0, %c0_0] : memref<64x32xf32, #tpu.memory_space<vmem>>, vector<64x32xf32>
    %c0_1 = arith.constant 0 : index
    %c0_2 = arith.constant 0 : index
    %c0_3 = arith.constant 0 : index
    %1 = vector.load %arg2[%c0_1, %c0_2, %c0_3] : memref<1x32x128xf32, #tpu.memory_space<vmem>>, vector<1x32x128xf32>
    %2 = vector.shape_cast %1 : vector<1x32x128xf32> to vector<32x128xf32>
    %cst = arith.constant dense<0.000000e+00> : vector<64x128xf32>
    %3 = tpu.matmul %0, %2, %cst {dimension_numbers = #tpu.dot_dimension_numbers<[1], [0], [0], [1], [0, 0, 1, 1], [], []>, precision = #tpu.contract_precision<fp32>} : vector<64x32xf32>, vector<32x128xf32>, vector<64x128xf32> -> vector<64x128xf32>
    %c0_4 = arith.constant 0 : index
    %c0_5 = arith.constant 0 : index
    %4 = vector.load %arg6[%c0_4, %c0_5] : memref<64x128xf32, #tpu.memory_space<vmem>>, vector<64x128xf32>
    tpu.vector_store %arg6[%c0_4, %c0_5], %3 {strides = array<i32>} : memref<64x128xf32, #tpu.memory_space<vmem>>, vector<64x128xf32>,
    %5 = tpu.iota {dimensions = array<i32: 0>} : vector<64x128xi32>
    %c0_i32 = arith.constant 0 : i32
    %c128_i32 = arith.constant 128 : i32
    %6 = arith.muli %c0_i32, %c128_i32 : i32
    %7 = tpu.assume_multiple %6, 128 : i32
    %c0_6 = arith.constant 0 : index
    %8 = arith.index_cast %7 : i32 to index
    %9 = vector.load %arg6[%c0_6, %8] : memref<64x128xf32, #tpu.memory_space<vmem>>, vector<64x128xf32>
    %cst_7 = arith.constant dense<0xFF800000> : vector<128xf32>
    %10 = vector.multi_reduction <maximumf>, %9, %cst_7 [0] : vector<64x128xf32> to vector<128xf32>
    %11 = vector.shape_cast %10 : vector<128xf32> to vector<1x128xf32>
    %12 = vector.broadcast %11 : vector<1x128xf32> to vector<64x128xf32>
    %13 = arith.cmpf oeq, %9, %12 : vector<64x128xf32>
    %c64_i32 = arith.constant 64 : i32
    %14 = vector.broadcast %c64_i32 : i32 to vector<64x128xi32>
    %15 = arith.select %13, %5, %14 : vector<64x128xi1>, vector<64x128xi32>
    %cst_8 = arith.constant dense<2147483647> : vector<128xi32>
    %16 = vector.multi_reduction <minsi>, %15, %cst_8 [0] : vector<64x128xi32> to vector<128xi32>
    %17 = vector.shape_cast %16 : vector<128xi32> to vector<1x128xi32>
    %18 = vector.broadcast %17 : vector<1x128xi32> to vector<64x128xi32>
    %19 = arith.cmpi eq, %5, %18 : vector<64x128xi32>
    %cst_9 = arith.constant 1.000000e+00 : f32
    %cst_10 = arith.constant 0.000000e+00 : f32
    %20 = vector.broadcast %cst_9 : f32 to vector<64x128xf32>
    %21 = vector.broadcast %cst_10 : f32 to vector<64x128xf32>
    %22 = arith.select %19, %20, %21 : vector<64x128xi1>, vector<64x128xf32>
    %c0_11 = arith.constant 0 : index
    %c0_12 = arith.constant 0 : index
    %23 = vector.load %arg4[%c0_11, %c0_12] : memref<32x64xf32, #tpu.memory_space<vmem>>, vector<32x64xf32>
    %cst_13 = arith.constant dense<0.000000e+00> : vector<32x128xf32>
    %24 = tpu.matmul %23, %22, %cst_13 {dimension_numbers = #tpu.dot_dimension_numbers<[1], [0], [0], [1], [0, 0, 1, 1], [], []>, precision = #tpu.contract_precision<fp32>} : vector<32x64xf32>, vector<64x128xf32>, vector<32x128xf32> -> vector<32x128xf32>
    %c0_14 = arith.constant 0 : index
    %c0_15 = arith.constant 0 : index
    %25 = arith.index_cast %7 : i32 to index
    %26 = vector.load %arg5[%c0_14, %c0_15, %25] : memref<1x32x128xf32, #tpu.memory_space<vmem>>, vector<1x32x128xf32>
    %27 = vector.shape_cast %26 : vector<1x32x128xf32> to vector<32x128xf32>
    %28 = vector.shape_cast %24 : vector<32x128xf32> to vector<1x32x128xf32>
    tpu.vector_store %arg5[%c0_14, %c0_15, %25], %28 {strides = array<i32>} : memref<1x32x128xf32, #tpu.memory_space<vmem>>, vector<1x32x128xf32>,
    %c1_i32 = arith.constant 1 : i32
    return
  }
  func.func @transform_0(%arg0: i32, %arg1: i32) -> (i32, i32, i32) {
    %c0_i32 = arith.constant 0 : i32
    %c0_i32_0 = arith.constant 0 : i32
    return %arg0, %c0_i32, %arg1 : i32, i32, i32
  }
  func.func @transform_1(%arg0: i32, %arg1: i32) -> (i32, i32) {
    %c0_i32 = arith.constant 0 : i32
    %c0_i32_0 = arith.constant 0 : i32
    %c0_i32_1 = arith.constant 0 : i32
    return %c0_i32, %c0_i32_0 : i32, i32
  }
  func.func @transform_2(%arg0: i32, %arg1: i32) -> (i32, i32) {
    %c0_i32 = arith.constant 0 : i32
    %c0_i32_0 = arith.constant 0 : i32
    %c0_i32_1 = arith.constant 0 : i32
    return %c0_i32, %c0_i32_0 : i32, i32
  }
  func.func @transform_3(%arg0: i32, %arg1: i32) -> (i32, i32, i32) {
    %c0_i32 = arith.constant 0 : i32
    %c0_i32_0 = arith.constant 0 : i32
    return %arg0, %c0_i32, %arg1 : i32, i32, i32
  }
}

</mosaic_0001>

<bundles_post_ra>
// kernel: tpu_custom_call.1
= control target key start
LH: loop header
LB: loop body
LE: loop exit
PB: predicated region body
PF: predicated region fallthrough
CT: control target
= control target key end

     0   :  { %8 = vsyncpa [#allocation4], 0  ;;  %s3425_s0 = inlined_call_operand.hbm [shape: f32[2,32,256], index: 0, kind: input, shape index: {}]   ;;  %s3426_s1 = inlined_call_operand.vmem [shape: f32[64,32], index: 1, kind: input, shape index: {}]   ;;  %s3427_s2 = inlined_call_operand.vmem [shape: f32[32,64], index: 2, kind: input, shape index: {}]   ;;  %s3428_s3 = inlined_call_operand.hbm [shape: f32[2,32,256], index: 3, kind: output, shape index: {}]  }
   0x1   :  { %10 = vsyncpa [#allocation4 + $0x1], 0 }
   0x2   :  { %11 = vsyncpa [#allocation5], 0 }
   0x3   :  { %13 = vsyncpa [#allocation5 + $0x1], 0  ;;  %s2749_s12 = smov 0   ;;  %s2751_s13 = smov 0  }
   0x4   :  { %s2753_s14 = smov 0   ;;  %s2755_s15 = smov 0  }
   0x5   :  { %s2757_s16 = smov 0   ;;  %s2759_s17 = smov 0  }
   0x6   :  { %s2761_s18 = smov 0   ;;  %s2763_s19 = smov 0  }
   0x7 LB: > { %s1864_s20 = sadd.s32 4294967295, %s2717_s19   ;;  %s1865_s21 = sadd.s32 4294967294, %s2717_s19   ;;  %s2717_s19 = sphi %s2763_s19, %s19_s19   ;;  %s2713_s18 = sphi %s2761_s18, %s3454_s18   ;;  %s2709_s17 = sphi %s2759_s17, %s3453_s17   ;;  %s2705_s16 = sphi %s2757_s16, %s3452_s16   ;;  %s2701_s15 = sphi %s2755_s15, %s3451_s15   ;;  %s2697_s14 = sphi %s2753_s14, %s3450_s14   ;;  %s2693_s13 = sphi %s2751_s13, %s3449_s13   ;;  %s2689_s12 = sphi %s2749_s12, %s3448_s12  }
   0x8   : > { %s28_s22 = sadd.s32 1, %s2709_s17  ;;  %s31_s23 = sadd.s32 1, %s2713_s18 }
   0x9   : > { %p29_p0 = scmp.ge.s32.totalorder %s28_s22, 2  ;;  %s40_s24 = sadd.s32 1, %s2697_s14 }
   0xa   : > { %p47_p1 = scmp.ne.s32.totalorder %s2697_s14, %s2693_s13  ;;  %p48_p2 = scmp.eq.s32.totalorder %s2717_s19, 0 }
   0xb   : > { %s3456_s22 = smov (%p29_p0, %s28_s22), 0  ;;  %s3458_s23 = smov (!%p29_p0, %s31_s23), %s2713_s18 }
   0xc   : > { %s36_s25 = ssub.s32 %s2709_s17, %s3456_s22  ;;  %p2802_p3 = por %p48_p2, %p47_p1 }
   0xd   : > { %p33_p4 = scmp.ge.s32.totalorder %s3458_s23, 2  ;;  %p53_p5 = scmp.ne.s32.totalorder %s2693_s13, %s2689_s12 }
   0xe   : > { %p54_p6 = scmp.eq.s32.totalorder %s1864_s20, 0  ;;  %p121_p7 = scmp.eq.s32.totalorder %s1864_s20, 3 }
   0xf   : > { %s3460_s23 = smov (%p33_p4, %s3458_s23), 0  ;;  %p127_p10 = scmp.eq.s32.totalorder %s1865_s21, 3 }
  0x10   : > { %3432 = sst [smem:[#allocation9_spill]] %s3460_s23  ;;  %p2810_p8 = por %p54_p6, %p53_p5 }
  0x11   : > { %p2814_p9 = por %p121_p7, %p47_p1  ;;  %s35_s29 = ssub.s32 %s2713_s18, %s3460_s23 }
  0x12   : > { %s37_s30 = sor.u32 %s36_s25, %s35_s29  ;;  %p2820_p12 = por %p127_p10, %p53_p5 }
  0x13   : > { %s3434_s28 = scalar_select %p2814_p9, 1, 0 }
  0x14   : > { %p38_p11 = scmp.eq.s32.totalorder %s37_s30, 0  ;;  %p2515_p13 = scmp.lt.s32.totalorder %s2717_s19, 4 }
  0x15   : > { %s3435_s4 = scalar_select %p2820_p12, 1, 0 }
  0x16   : > { %s153_s5 = sand.u32 1, %s2697_s14   ;;  %s1869_s8 = sshll.u32 %s2713_s18, 3 }
  0x17   : > { %s2827_s6 = scalar_select %p38_p11, %s2697_s14, %s40_s24  }
  0x18   : > { %s1868_s7 = sshll.u32 %s153_s5, 5  ;;  %s162_s9 = sadd.s32 %s2709_s17, %s1869_s8 }
  0x19   : > { %s157_s10 = scalar_lea.vmem [#allocation3], %s1868_s7  ;;  %s1870_s20 = sshll.u32 %s162_s9, 7 }
  0x1a   : > { %s165_s11 = sshll.u32 %s157_s10, 4  ;;  %s2836_s25 = scalar_lea.hbm %s3425_s0, %s1870_s20  ;;  %s2831_s11 = int_to_ptr.vmem [resolvable:$true] %s165_s11 }
  0x1b   : > { %p2840_p0 = pnand %p2515_p13, %p2802_p3  ;;  %s2844_s29 = scalar_lea.sflag [#allocation4], %s153_s5 }
  0x1c   : > { %s2589_s30 = scalar_lea.hbm %s2836_s25, 512  ;;  %s2594_s7 = scalar_lea.hbm %s3425_s0, 2048 }
  0x1d   : > { %p2590_p1 = scmp.ne.s32.totalorder %s2836_s25, %s2589_s30  ;;  %p2591_p2 = pneg %p2840_p0 }
  0x1e   : > { %p2595_p3 = scmp.lt.u32.totalorder %s2836_s25, %s3425_s0  ;;  %p2596_p6 = scmp.lt.u32.totalorder %s2594_s7, %s2589_s30 }
  0x1f   : > { %p2592_p4 = pnand %p2591_p2, %p2590_p1  ;;  %p2598_p10 = scmp.lt.u32.totalorder %s2589_s30, %s2836_s25 }
  0x20   : > { %p2597_p7 = por %p2596_p6, %p2595_p3 }
  0x21   : > { %p2593_p5 = pneg %p2592_p4 }
  0x22   : > { %p2599_p11 = por %p2598_p10, %p2597_p7 }
  0x24   : > { %p2600_p13 = pnand %p2599_p11, %p2593_p5 }
  0x26   : > { %2603 = shalt.err (!%p2600_p13)
}
  0x27   : > { %s2604_s5 = scalar_lea.vmem %s2831_s11, 512  ;;  %s2719_s10 = smov [#allocation3]  }
  0x28   : > { %p2605_p1 = scmp.ne.s32.totalorder %s2831_s11, %s2604_s5  ;;  %s2609_s20 = sshll.u32 %s2719_s10, 4  ;;  %s2610_s20 = int_to_ptr.vmem [resolvable:$false] %s2609_s20 }
  0x29   : > { %s2611_s21 = scalar_lea.vmem %s2610_s20, 1024  ;;  %p2612_p9 = scmp.lt.s32.totalorder %s2831_s11, %s2610_s20 }
  0x2a   : > { %p2607_p4 = pnand %p2605_p1, %p2591_p2  ;;  %p2613_p3 = scmp.lt.s32.totalorder %s2611_s21, %s2604_s5 }
  0x2c   : > { %p2608_p12 = pneg %p2607_p4  ;;  %p2614_p6 = por %p2613_p3, %p2612_p9 }
  0x2e   : > { %p2615_p7 = pnand %p2614_p6, %p2608_p12 }
  0x30   : > { %2618 = shalt.err (!%p2615_p7)
}
  0x31   : > { %s2720_s30 = smov 256   ;;  %s2721_s23 = smov 128  }
  0x32   : > { %s2722_s26 = smov 8   ;;  %p1871_p2 = scmp.ge.s32.totalorder %s2717_s19, 1 }
  0x33   : > { %2510 = dma.hbm_to_vmem [thread:$0]  (!%p2840_p0), %s2836_s25, 512, %s2831_s11, %s2844_s29, %s2720_s30, %s2721_s23, %s2722_s26  }
  0x34   : > { %p173_p5 = scmp.lt.s32.totalorder %s2717_s19, 5 }
  0x36   : > { %p174_p10 = pnand %p1871_p2, %p173_p5 }
  0x37   : > { %s2875_s7 = sand.u32 (!%p174_p10), 1, %s2693_s13  }
  0x38   : > { %177 = sbr.rel (%p174_p10) target bundleno = 754 (0x2f2), region = 32  ;;  %s1872_s8 = sshll.u32 (!%p174_p10), %s2875_s7, 5 }
  0x39   : > { %s180_s9 = scalar_lea.sflag (!%p174_p10), [#allocation4], %s2875_s7  ;;  %s183_s5 = scalar_lea.vmem (!%p174_p10), [#allocation3], %s1872_s8 }
  0x3f   : > { %2680 = dma.done.wait (%p2810_p8), %s180_s9, 512  }
  0x40   : > { %2682 = vsyncadd (%p2810_p8), %s180_s9, 4294966784  ;;  %vm218_vm0 = vcmask 261120   ;;  %v214_v0 = vld [vmem:[%s183_s5] sm:$0xff]  ;;  %v215_v1 = vld [vmem:[%s183_s5 + $0x8] sm:$0xff]  ;;  %vm1126_vm1 = vcmask 523264   ;;  %s1899_s9 = sshll.u32 %s2705_s16, 3 }
  0x41   : > { %v216_v2 = vld [vmem:[%s183_s5 + $0x10] sm:$0xff]  ;;  %v244_v3 = vand.u32 4294901760, %v214_v0  ;;  %v247_v4 = vand.u32 4294901760, %v215_v1  ;;  %v217_v5 = vld [vmem:[%s183_s5 + $0x18] sm:$0xff]  ;;  %v206_v7 = vld [vmem:[%s3426_s1] sm:$0xff]  ;;  %s1773_s5 = sadd.s32 %s2701_s15, %s1899_s9  ;;  %s205_s11 = scalar_lea.vmem [#allocation6], %s1872_s8 }
  0x42   : > { %v250_v6 = vand.u32 4294901760, %v216_v2  ;;  %v207_v8 = vld [vmem:[%s3426_s1 + $0x8] sm:$0xff]  ;;  %v253_v9 = vand.u32 4294901760, %v217_v5  ;;  %v220_v10 = vsel %vm218_vm0, %v206_v7, 0  ;;  %v208_v12 = vld [vmem:[%s3426_s1 + $0x10] sm:$0xff]  ;;  %v209_v13 = vld [vmem:[%s3426_s1 + $0x18] sm:$0xff] }
  0x43   : > { %v223_v11 = vsel %vm218_vm0, %v207_v8, 0  ;;  %v2899_v14 = vpack.c.bf16 %v247_v4, %v244_v3  ;;  %v2901_v15 = vand.u32 4294901760, %v220_v10  ;;  %v2905_v17 = vsub.f32 %v214_v0, %v244_v3  ;;  %v210_v18 = vld [vmem:[%s3426_s1 + $0x20] sm:$0xff]  ;;  %v211_v19 = vld [vmem:[%s3426_s1 + $0x28] sm:$0xff]  ;;  %v212_v48 = vld [vmem:[%s3426_s1 + $0x30] sm:$0xff]  ;;  %s1776_s25 = sshll.u32 %s205_s11, 4  ;;  %s3366_s25 = int_to_ptr.vmem [resolvable:$true] %s1776_s25 }
  0x44   : > { %v2903_v16 = vand.u32 4294901760, %v223_v11  ;;  %v2913_v20 = vpack.c.bf16 %v253_v9, %v250_v6  ;;  %v2915_v21 = vsub.f32 %v215_v1, %v247_v4  ;;  %v226_v22 = vsel %vm218_vm0, %v208_v12, 0  ;;  %v213_v57 = vld [vmem:[%s3426_s1 + $0x38] sm:$0xff]  ;;  %s1900_s24 = sshll.u32 %s1773_s5, 7  ;;  %s1762_s15 = scalar_lea.sflag [#allocation5], %s2875_s7 }
  0x45   : > { %v229_v23 = vsel %vm218_vm0, %v209_v13, 0  ;;  %2300 = vmatprep.subr.bf16.mxu0 %v2899_v14  ;;  %v2921_v24 = vsub.f32 %v220_v10, %v2901_v15  ;;  %v395_v26 = vand.u32 4294901760, %v2905_v17  ;;  %v2927_v27 = vand.u32 4294901760, %v226_v22  ;;  %s3371_s16 = scalar_lea.hbm %s3428_s3, %s1900_s24  ;;  %s2619_s8 = scalar_lea.vmem %s3366_s25, 512 }
  0x46   : > { %v2924_v25 = vsub.f32 %v223_v11, %v2903_v16  ;;  %2302 = vmatpush3.bf16.msra.mxu0 %v2899_v14  ;;  %v402_v28 = vand.u32 4294901760, %v2915_v21  ;;  %v2931_v29 = vand.u32 4294901760, %v229_v23  ;;  %v232_v30 = vsel %vm218_vm0, %v210_v18, 0  ;;  %p2620_p8 = scmp.ne.s32.totalorder %s3366_s25, %s2619_s8  ;;  %p3445_p9 = scmp.ne.s32.totalorder %s3434_s28, 0 }
  0x47   : > { %v235_v31 = vsel %vm218_vm0, %v211_v19, 0  ;;  %2304 = vmatprep.subr.bf16.mxu0 %v2913_v20  ;;  %v314_v32 = vand.u32 4294901760, %v2921_v24  ;;  %v396_v34 = vsub.f32 %v2905_v17, %v395_v26  ;;  %v2942_v35 = vsub.f32 %v226_v22, %v2927_v27  ;;  %s2725_s10 = smov [#allocation6]  }
  0x48   : > { %v324_v33 = vand.u32 4294901760, %v2924_v25  ;;  %v403_v36 = vsub.f32 %v2915_v21, %v402_v28  ;;  %v2948_v37 = vsub.f32 %v229_v23, %v2931_v29  ;;  %v2950_v38 = vand.u32 4294901760, %v232_v30  ;;  %p2621_p12 = pnand %p2620_p8, %p3445_p9  ;;  %s2623_s20 = sshll.u32 %s2725_s10, 4  ;;  %s2624_s20 = int_to_ptr.vmem [resolvable:$false] %s2623_s20 }
  0x49   : > { %v2952_v39 = vand.u32 4294901760, %v235_v31  ;;  %v315_v40 = vsub.f32 %v2921_v24, %v314_v32  ;;  %v397_v42 = vand.u32 4294901760, %v396_v34  ;;  %v334_v43 = vand.u32 4294901760, %v2942_v35  ;;  %s2625_s21 = scalar_lea.vmem %s2624_s20, 1024  ;;  %p2626_p11 = scmp.lt.s32.totalorder %s3366_s25, %s2624_s20 }
  0x4a   : > { %v325_v41 = vsub.f32 %v2924_v25, %v324_v33  ;;  %2306 = vmatpush3.bf16.msra.mxu0 %v2913_v20  ;;  %v404_v44 = vand.u32 4294901760, %v403_v36  ;;  %v344_v45 = vand.u32 4294901760, %v2948_v37  ;;  %v2964_v46 = vsub.f32 %v232_v30, %v2950_v38  ;;  %p2622_p0 = pneg %p2621_p12  ;;  %p2627_p13 = scmp.lt.s32.totalorder %s2625_s21, %s2619_s8 }
  0x4b   : > { %v2967_v47 = vsub.f32 %v235_v31, %v2952_v39  ;;  %v316_v49 = vand.u32 4294901760, %v315_v40  ;;  %v335_v51 = vsub.f32 %v2942_v35, %v334_v43  ;;  %v2975_v52 = vsub.f32 %v216_v2, %v250_v6 }
  0x4c   : > { %v326_v50 = vand.u32 4294901760, %v325_v41  ;;  %v2307_v53 = vpack.c.bf16 %v404_v44, %v397_v42  ;;  %v345_v54 = vsub.f32 %v2948_v37, %v344_v45  ;;  %v354_v55 = vand.u32 4294901760, %v2964_v46  ;;  %p2628_p1 = por %p2627_p13, %p2626_p11 }
  0x4d   : > { %v364_v56 = vand.u32 4294901760, %v2967_v47  ;;  %2055 = vmatprep.mubr.f32.mxu0 %v316_v49  ;;  %v336_v58 = vand.u32 4294901760, %v335_v51  ;;  %v409_v59 = vand.u32 4294901760, %v2975_v52  ;;  %v2986_v60 = vsub.f32 %v217_v5, %v253_v9 }
  0x4e   : > { %v238_v61 = vsel %vm218_vm0, %v212_v48, 0  ;;  %2056 = vmatmul.mubr.f32.vlgmr.msra.gmra.mrb[0].mxu0 %v326_v50  ;;  %2308 = vmatprep.subr.bf16.mxu0 %v2307_v53  ;;  %v346_v62 = vand.u32 4294901760, %v345_v54  ;;  %v355_v63 = vsub.f32 %v2964_v46, %v354_v55  ;;  %v241_v4 = vsel %vm218_vm0, %v213_v57, 0  ;;  %p2629_p4 = pnand %p2628_p1, %p2622_p0 }
  0x4f   : > { %v365_v0 = vsub.f32 %v2967_v47, %v364_v56  ;;  %v2995_v1 = vand.u32 4294901760, %v238_v61  ;;  %2310 = vmatpush3.bf16.msra.mxu0 %v2307_v53  ;;  %2058 = vmatprep.mubr.f32.mxu0 %v336_v58  ;;  %v410_v2 = vsub.f32 %v2975_v52, %v409_v59  ;;  %v416_v3 = vand.u32 4294901760, %v2986_v60 }
  0x50   : > { %v356_v5 = vand.u32 4294901760, %v355_v63  ;;  %v3003_v7 = vand.u32 4294901760, %v241_v4  ;;  %v2315_v23 = vpack.c.bf16 %v2915_v21, %v2905_v17  ;;  %v2319_v36 = vpack.c.bf16 %v2986_v60, %v2975_v52 }
  0x51   : > { %v373_v6 = vsub.f32 %v238_v61, %v2995_v1  ;;  %v411_v8 = vand.u32 4294901760, %v410_v2  ;;  %v417_v9 = vsub.f32 %v2986_v60, %v416_v3  ;;  %v366_v10 = vand.u32 4294901760, %v365_v0 }
  0x52   : > { %2059 = vmatmul.mubr.f32.gmra.mrb[2].mxu0 %v346_v62  ;;  %v383_v12 = vsub.f32 %v241_v4, %v3003_v7  ;;  %v2331_v40 = vpack.c.bf16 %v402_v28, %v395_v26  ;;  %v2335_v17 = vpack.c.bf16 %v416_v3, %v409_v59 }
  0x53   : > { %v374_v11 = vand.u32 4294901760, %v373_v6  ;;  %2061 = vmatprep.mubr.f32.mxu0 %v356_v5  ;;  %v418_v13 = vand.u32 4294901760, %v417_v9 }
  0x54   : > { %v384_v19 = vand.u32 4294901760, %v383_v12 }
  0x55   : > { %v375_v18 = vsub.f32 %v373_v6, %v374_v11  ;;  %v2311_v22 = vpack.c.bf16 %v418_v13, %v411_v8 }
  0x56   : > { %2062 = vmatmul.mubr.f32.gmra.mrb[4].mxu0 %v366_v10  ;;  %v385_v31 = vsub.f32 %v383_v12, %v384_v19 }
  0x57   : > { %v376_v30 = vand.u32 4294901760, %v375_v18  ;;  %2312 = vmatprep.subr.bf16.mxu0 %v2311_v22 }
  0x58   : > { %2314 = vmatpush3.bf16.msra.mxu0 %v2311_v22  ;;  %v386_v34 = vand.u32 4294901760, %v385_v31  ;;  %v1124_v22 = vld [vmem:[%s3427_s2 + $0x10] sm:$0xff] }
  0x59   : > { %2064 = vmatprep.mubr.f32.mxu0 %v376_v30  ;;  %2316 = vmatprep.subr.bf16.mxu0 %v2315_v23  ;;  %v1134_v31 = vsel %vm1126_vm1, %v1124_v22, 0 }
  0x5a   : > { %2065 = vmatmul.mubr.f32.gmra.mrb[6].mxu0 %v386_v34 }
  0x5b   : > { %2075 = vmatprep.mubr.f32.mxu0 %v2901_v15 }
  0x5e   : > { %2076 = vmatmul.mubr.f32.vlgmr.msra.gmra.mrb[0].mxu0 %v2903_v16 }
  0x5f   : > { %2318 = vmatpush3.bf16.msra.mxu0 %v2315_v23  ;;  %2078 = vmatprep.mubr.f32.mxu0 %v2927_v27 }
  0x60   : > { %2320 = vmatprep.subr.bf16.mxu0 %v2319_v36 }
  0x62   : > { %2079 = vmatmul.mubr.f32.gmra.mrb[2].mxu0 %v2931_v29 }
  0x63   : > { %2081 = vmatprep.mubr.f32.mxu0 %v2950_v38  ;;  %2322 = vmatpush3.bf16.msra.mxu0 %v2319_v36  ;;  %v1125_v36 = vld [vmem:[%s3427_s2 + $0x18] sm:$0xff] }
  0x64   : > { %2324 = vmatprep.subr.bf16.mxu0 %v2899_v14 }
  0x66   : > { %2082 = vmatmul.mubr.f32.gmra.mrb[4].mxu0 %v2952_v39 }
  0x67   : > { %2084 = vmatprep.mubr.f32.mxu0 %v2995_v1 }
  0x6a   : > { %2085 = vmatmul.mubr.f32.gmra.mrb[6].mxu0 %v3003_v7 }
  0x6b   : > { %2095 = vmatprep.mubr.f32.mxu0 %v2921_v24 }
  0x6e   : > { %2096 = vmatmul.mubr.f32.vlgmr.msra.gmra.mrb[0].mxu0 %v2924_v25 }
  0x6f   : > { %2326 = vmatpush3.bf16.msra.mxu0 %v2899_v14  ;;  %2098 = vmatprep.mubr.f32.mxu0 %v2942_v35 }
  0x70   : > { %2328 = vmatprep.subr.bf16.mxu0 %v2913_v20 }
  0x72   : > { %2099 = vmatmul.mubr.f32.gmra.mrb[2].mxu0 %v2948_v37 }
  0x73   : > { %2101 = vmatprep.mubr.f32.mxu0 %v2964_v46  ;;  %2330 = vmatpush3.bf16.msra.mxu0 %v2913_v20 }
  0x74   : > { %2332 = vmatprep.subr.bf16.mxu0 %v2331_v40 }
  0x76   : > { %2102 = vmatmul.mubr.f32.gmra.mrb[4].mxu0 %v2967_v47  ;;  %v1037_v47 = vlaneseq }
  0x77   : > { %2104 = vmatprep.mubr.f32.mxu0 %v373_v6 }
  0x78   : > { %v3080_v50 = vshrl.u32 %v1037_v47, 7 }
  0x7a   : > { %2105 = vmatmul.mubr.f32.gmra.mrb[6].mxu0 %v383_v12  ;;  %v3083_v53 = vadd.s32 8, %v3080_v50  ;;  %v3086_v54 = vadd.s32 16, %v3080_v50  ;;  %v3092_v57 = vadd.s32 32, %v3080_v50  ;;  %v3095_v58 = vadd.s32 40, %v3080_v50 }
  0x7b   : > { %2115 = vmatprep.mubr.f32.mxu0 %v314_v32  ;;  %v3098_v59 = vadd.s32 48, %v3080_v50  ;;  %v3101_v60 = vadd.s32 56, %v3080_v50 }
  0x7e   : > { %2116 = vmatmul.mubr.f32.vlgmr.msra.gmra.mrb[0].mxu0 %v324_v33 }
  0x7f   : > { %2334 = vmatpush3.bf16.msra.mxu0 %v2331_v40  ;;  %2118 = vmatprep.mubr.f32.mxu0 %v334_v43 }
  0x80   : > { %2336 = vmatprep.subr.bf16.mxu0 %v2335_v17 }
  0x82   : > { %2119 = vmatmul.mubr.f32.gmra.mrb[2].mxu0 %v344_v45 }
  0x83   : > { %2121 = vmatprep.mubr.f32.mxu0 %v354_v55  ;;  %2338 = vmatpush3.bf16.msra.mxu0 %v2335_v17  ;;  %v3089_v55 = vadd.s32 24, %v3080_v50 }
  0x84   : > { %2340 = vmatprep.subr.bf16.mxu0 %v2899_v14 }
  0x86   : > { %2122 = vmatmul.mubr.f32.gmra.mrb[4].mxu0 %v364_v56 }
  0x87   : > { %2124 = vmatprep.mubr.f32.mxu0 %v374_v11  ;;  %v1123_v11 = vld [vmem:[%s3427_s2 + $0x8] sm:$0xff] }
  0x88   : > { %v1131_v18 = vsel %vm1126_vm1, %v1123_v11, 0 }
  0x89   : > { %v3118_v30 = vand.u32 4294901760, %v1131_v18 }
  0x8a   : > { %2125 = vmatmul.mubr.f32.gmra.mrb[6].mxu0 %v384_v19 }
  0x8b   : > { %2135 = vmatprep.mubr.f32.mxu0 %v2901_v15  ;;  %v3125_v17 = vsub.f32 %v1131_v18, %v3118_v30 }
  0x8e   : > { %2136 = vmatmul.mubr.f32.vlgmr.msra.gmra.mrb[0].mxu0 %v2903_v16 }
  0x8f   : > { %2342 = vmatpush3.bf16.msra.mxu0 %v2899_v14  ;;  %2138 = vmatprep.mubr.f32.mxu0 %v2927_v27  ;;  %v1122_v14 = vld [vmem:[%s3427_s2] sm:$0xff] }
  0x90   : > { %2344 = vmatprep.subr.bf16.mxu0 %v2913_v20 }
  0x92   : > { %2139 = vmatmul.mubr.f32.gmra.mrb[2].mxu0 %v2931_v29 }
  0x93   : > { %2141 = vmatprep.mubr.f32.mxu0 %v2950_v38  ;;  %2346 = vmatpush3.bf16.msra.mxu0 %v2913_v20 }
  0x96   : > { %2142 = vmatmul.mubr.f32.gmra.mrb[4].mxu0 %v2952_v39 }
  0x97   : > { %2144 = vmatprep.mubr.f32.mxu0 %v2995_v1 }
  0x9a   : > { %2145 = vmatmul.mubr.f32.gmra.mrb[6].mxu0 %v3003_v7 }
  0x9b   : > { %2155 = vmatprep.mubr.f32.mxu0 %v2901_v15  ;;  %v1128_v15 = vsel %vm1126_vm1, %v1122_v14, 0  ;;  %v3127_v14 = vand.u32 4294901760, %v1134_v31 }
  0x9e   : > { %2156 = vmatmul.mubr.f32.vlgmr.msra.gmra.mrb[0].mxu0 %v2903_v16  ;;  %v3071_v16 = vand.u32 4294901760, %v1128_v15 }
  0x9f   : > { %2158 = vmatprep.mubr.f32.mxu0 %v2927_v27 }
  0xa0   : > { %v3074_v20 = vsub.f32 %v1128_v15, %v3071_v16  ;;  %v1137_v15 = vsel %vm1126_vm1, %v1125_v36, 0 }
  0xa2   : > { %2159 = vmatmul.mubr.f32.gmra.mrb[2].mxu0 %v2931_v29  ;;  %v1206_v21 = vand.u32 4294901760, %v3074_v20 }
  0xa3   : > { %2161 = vmatprep.mubr.f32.mxu0 %v2950_v38 }
  0xa4   : > { %v1207_v24 = vsub.f32 %v3074_v20, %v1206_v21 }
  0xa6   : > { %2162 = vmatmul.mubr.f32.gmra.mrb[4].mxu0 %v2952_v39  ;;  %v1208_v25 = vand.u32 4294901760, %v1207_v24 }
  0xa7   : > { %2164 = vmatprep.mubr.f32.mxu0 %v2995_v1 }
  0xa8   : > { %2183 = vmatprep.mubr.f32.mxu1 %v1208_v25  ;;  %v1216_v25 = vand.u32 4294901760, %v3125_v17 }
  0xaa   : > { %2165 = vmatmul.mubr.f32.gmra.mrb[6].mxu0 %v3003_v7 }
 0x171   : > { %v2157_v26 = vpop.f32.mrb[0].mxu0 }
 0x172   : > { %v983_v27 = vpop.f32.mrb[1].mxu0 }
 0x175   : > { %v2160_v28 = vpop.f32.mrb[2].mxu0 }
 0x176   : > { %v995_v29 = vpop.f32.mrb[3].mxu0 }
 0x179   : > { %v2163_v32 = vpop.f32.mrb[4].mxu0 }
 0x17a   : > { %v1055_v33 = vmax.f32 %v2157_v26, %v2163_v32  ;;  %v1007_v35 = vpop.f32.mrb[5].mxu0 }
 0x17b   : > { %v1054_v37 = vmax.f32 %v983_v27, %v1007_v35 }
 0x17d   : > { %v1058_v38 = vmax.f32 %v1054_v37, %v1055_v33  ;;  %v2166_v39 = vpop.f32.mrb[6].mxu0 }
 0x17e   : > { %v1057_v41 = vmax.f32 %v2160_v28, %v2166_v39  ;;  %v1019_v42 = vpop.f32.mrb[7].mxu0 }
 0x17f   : > { %v1056_v43 = vmax.f32 %v995_v29, %v1019_v42 }
 0x181   : > { %v1059_v44 = vmax.f32 %v1056_v43, %v1057_v41 }
 0x183   : > { %v1060_v45 = vmax.f32 %v1058_v38, %v1059_v44  ;;  %v2724_v38 = vmov 1.0|1.0  }
 0x185   : > { %v1061_v46 = vrot.slane %v1060_v45, 4 }
 0x187   : > { %v1062_v48 = vmax.f32 %v1060_v45, %v1061_v46 }
 0x189   : > { %v1063_v49 = vrot.slane %v1062_v48, 2 }
 0x18b   : > { %v1064_v51 = vmax.f32 %v1062_v48, %v1063_v49 }
 0x18d   : > { %v1065_v52 = vrot.slane %v1064_v51, 1 }
 0x18f   : > { %v1066_v56 = vmax.f32 %v1064_v51, %v1065_v52 }
 0x191   : > { %vm1067_vm2 = vcmp.eq.f32.partialorder %v983_v27, %v1066_v56  ;;  %vm1068_vm3 = vcmp.eq.f32.partialorder %v2157_v26, %v1066_v56  ;;  %vm1069_vm4 = vcmp.eq.f32.partialorder %v995_v29, %v1066_v56  ;;  %vm1070_vm5 = vcmp.eq.f32.partialorder %v2160_v28, %v1066_v56 }
 0x192   : > { %vm1071_vm6 = vcmp.eq.f32.partialorder %v1007_v35, %v1066_v56  ;;  %vm1072_vm7 = vcmp.eq.f32.partialorder %v2163_v32, %v1066_v56  ;;  %vm1073_vm8 = vcmp.eq.f32.partialorder %v1019_v42, %v1066_v56  ;;  %vm1074_vm9 = vcmp.eq.f32.partialorder %v2166_v39, %v1066_v56 }
 0x193   : > { %v1075_v61 = vsel %vm1067_vm2, %v3080_v50, 64  ;;  %v1076_v62 = vsel %vm1068_vm3, %v3083_v53, 64  ;;  %v1077_v63 = vsel %vm1069_vm4, %v3086_v54, 64  ;;  %v1078_v0 = vsel %vm1070_vm5, %v3089_v55, 64 }
 0x194   : > { %v1079_v1 = vsel %vm1071_vm6, %v3092_v57, 64  ;;  %v1080_v2 = vsel %vm1072_vm7, %v3095_v58, 64  ;;  %v1081_v3 = vsel %vm1073_vm8, %v3098_v59, 64  ;;  %v1082_v4 = vsel %vm1074_vm9, %v3101_v60, 64 }
 0x195   : > { %vm1083_vm10 = vcmp.lt.s32.totalorder %v1075_v61, %v1079_v1  ;;  %vm1085_vm11 = vcmp.lt.s32.totalorder %v1076_v62, %v1080_v2  ;;  %vm1087_vm12 = vcmp.lt.s32.totalorder %v1077_v63, %v1081_v3  ;;  %vm1089_vm13 = vcmp.lt.s32.totalorder %v1078_v0, %v1082_v4 }
 0x196   : > { %v1084_v5 = vsel %vm1083_vm10, %v1075_v61, %v1079_v1  ;;  %v1086_v6 = vsel %vm1085_vm11, %v1076_v62, %v1080_v2  ;;  %v1088_v7 = vsel %vm1087_vm12, %v1077_v63, %v1081_v3  ;;  %v1090_v8 = vsel %vm1089_vm13, %v1078_v0, %v1082_v4 }
 0x197   : > { %vm1091_vm14 = vcmp.lt.s32.totalorder %v1084_v5, %v1086_v6  ;;  %vm1093_vm15 = vcmp.lt.s32.totalorder %v1088_v7, %v1090_v8  ;;  %v2723_v26 = vmov 0.0   ;;  %v3137_v28 = vsub.f32 %v1134_v31, %v3127_v14 }
 0x198   : > { %v1092_v9 = vsel %vm1091_vm14, %v1084_v5, %v1086_v6  ;;  %v1094_v10 = vsel %vm1093_vm15, %v1088_v7, %v1090_v8  ;;  %v3139_v29 = vand.u32 4294901760, %v1137_v15 }
 0x199   : > { %vm1095_vm0 = vcmp.lt.s32.totalorder %v1092_v9, %v1094_v10  ;;  %v1226_v63 = vand.u32 4294901760, %v3137_v28 }
 0x19a   : > { %v1096_v12 = vsel %vm1095_vm0, %v1092_v9, %v1094_v10  ;;  %v3179_v48 = vsub.f32 %v1137_v15, %v3139_v29 }
 0x19b   : > { %v1097_v13 = vrot.slane %v1096_v12, 4  ;;  %v1227_v9 = vsub.f32 %v3137_v28, %v1226_v63 }
 0x19d   : > { %vm1098_vm2 = vcmp.lt.s32.totalorder %v1096_v12, %v1097_v13 }
 0x19e   : > { %v1099_v19 = vsel %vm1098_vm2, %v1096_v12, %v1097_v13 }
 0x19f   : > { %v1100_v23 = vrot.slane %v1099_v19, 2 }
 0x1a1   : > { %vm1101_vm3 = vcmp.lt.s32.totalorder %v1099_v19, %v1100_v23 }
 0x1a2   : > { %v1102_v34 = vsel %vm1101_vm3, %v1099_v19, %v1100_v23  ;;  %v1228_v23 = vand.u32 4294901760, %v1227_v9 }
 0x1a3   : > { %v1103_v40 = vrot.slane %v1102_v34, 1 }
 0x1a5   : > { %vm1104_vm4 = vcmp.lt.s32.totalorder %v1102_v34, %v1103_v40 }
 0x1a6   : > { %v1105_v24 = vsel %vm1104_vm4, %v1102_v34, %v1103_v40 }
 0x1a7   : > { %vm1108_vm5 = vcmp.eq.s32.totalorder %v3086_v54, %v1105_v24  ;;  %vm1106_vm6 = vcmp.eq.s32.totalorder %v3080_v50, %v1105_v24  ;;  %vm1107_vm7 = vcmp.eq.s32.totalorder %v3083_v53, %v1105_v24  ;;  %vm1112_vm1 = vcmp.eq.s32.totalorder %v3098_v59, %v1105_v24 }
 0x1a8   : > { %v1116_v27 = vsel %vm1108_vm5, 1.0, %v2723_v26  ;;  %vm1113_vm8 = vcmp.eq.s32.totalorder %v3101_v60, %v1105_v24  ;;  %v1114_v33 = vsel %vm1106_vm6, 1.0, %v2723_v26  ;;  %vm3145_vm9 = vmpackc.low %vm1107_vm7, %vm1106_vm6  ;;  %v1115_v37 = vsel %vm1107_vm7, 1.0, %v2723_v26 }
 0x1a9   : > { %v3143_v32 = vsub.f32 %v1116_v27, %v1116_v27  ;;  %2348 = vmatprep.subr.msk.bf16.mxu1 %vm3145_vm9, %v2724_v38  ;;  %v3152_v39 = vsub.f32 %v1114_v33, %v1114_v33  ;;  %vm1109_vm10 = vcmp.eq.s32.totalorder %v3089_v55, %v1105_v24  ;;  %vm1110_vm11 = vcmp.eq.s32.totalorder %v3092_v57, %v1105_v24  ;;  %vm3233_vm15 = vmpackc.low %vm1113_vm8, %vm1112_vm1 }
 0x1aa   : > { %v3156_v41 = vsub.f32 %v1115_v37, %v1115_v37  ;;  %2350 = vmatpush3.bf16.msk.msra.mxu1 %vm3145_vm9, %v2724_v38  ;;  %v1117_v42 = vsel %vm1109_vm10, 1.0, %v2723_v26  ;;  %vm3163_vm12 = vmpackc.low %vm1109_vm10, %vm1108_vm5  ;;  %vm1111_vm13 = vcmp.eq.s32.totalorder %v3095_v58, %v1105_v24  ;;  %v1118_v44 = vsel %vm1110_vm11, 1.0, %v2723_v26 }
 0x1ab   : > { %2352 = vmatprep.subr.msk.bf16.mxu1 %vm3163_vm12, %v2724_v38  ;;  %v3173_v45 = vsub.f32 %v1117_v42, %v1117_v42  ;;  %v1119_v46 = vsel %vm1111_vm13, 1.0, %v2723_v26  ;;  %v1246_v47 = vand.u32 4294901760, %v3152_v39  ;;  %v1120_v49 = vsel %vm1112_vm1, 1.0, %v2723_v26  ;;  %vm3202_vm14 = vmpackc.low %vm1111_vm13, %vm1110_vm11 }
 0x1ac   : > { %v3183_v50 = vsub.f32 %v1118_v44, %v1118_v44  ;;  %v1252_v51 = vand.u32 4294901760, %v3156_v41  ;;  %v1258_v52 = vand.u32 4294901760, %v3143_v32  ;;  %v1121_v53 = vsel %vm1113_vm8, 1.0, %v2723_v26 }
 0x1ad   : > { %v3189_v54 = vsub.f32 %v1119_v46, %v1119_v46  ;;  %v1247_v55 = vsub.f32 %v3152_v39, %v1246_v47  ;;  %v1264_v56 = vand.u32 4294901760, %v3173_v45  ;;  %v1217_v57 = vsub.f32 %v3125_v17, %v1216_v25 }
 0x1ae   : > { %2354 = vmatpush3.bf16.msk.msra.mxu1 %vm3163_vm12, %v2724_v38  ;;  %v1253_v62 = vsub.f32 %v3156_v41, %v1252_v51  ;;  %v1236_v58 = vand.u32 4294901760, %v3179_v48  ;;  %v3217_v0 = vsub.f32 %v1120_v49, %v1120_v49  ;;  %v3219_v1 = vsub.f32 %v1121_v53, %v1121_v53 }
 0x1af   : > { %2356 = vmatprep.subr.msk.bf16.mxu1 %vm3202_vm14, %v2724_v38  ;;  %v1259_v2 = vsub.f32 %v3143_v32, %v1258_v52  ;;  %v1270_v3 = vand.u32 4294901760, %v3183_v50  ;;  %v1248_v4 = vand.u32 4294901760, %v1247_v55  ;;  %v1265_v6 = vsub.f32 %v3173_v45, %v1264_v56 }
 0x1b0   : > { %v1254_v5 = vand.u32 4294901760, %v1253_v62  ;;  %v1276_v7 = vand.u32 4294901760, %v3189_v54  ;;  %v1218_v10 = vand.u32 4294901760, %v1217_v57  ;;  %v1282_v60 = vand.u32 4294901760, %v3217_v0 }
 0x1b1   : > { %v1271_v59 = vsub.f32 %v3183_v50, %v1270_v3  ;;  %v1288_v11 = vand.u32 4294901760, %v3219_v1  ;;  %v1237_v12 = vsub.f32 %v3179_v48, %v1236_v58  ;;  %v1260_v18 = vand.u32 4294901760, %v1259_v2 }
 0x1b2   : > { %2358 = vmatpush3.bf16.msk.msra.mxu1 %vm3202_vm14, %v2724_v38  ;;  %v2363_v13 = vpack.c.bf16 %v1254_v5, %v1248_v4  ;;  %v1266_v19 = vand.u32 4294901760, %v1265_v6  ;;  %v1277_v22 = vsub.f32 %v3189_v54, %v1276_v7  ;;  %v1283_v31 = vsub.f32 %v3217_v0, %v1282_v60 }
 0x1b3   : > { %2360 = vmatprep.subr.msk.bf16.mxu1 %vm3233_vm15, %v2724_v38  ;;  %v1238_v34 = vand.u32 4294901760, %v1237_v12  ;;  %v1272_v40 = vand.u32 4294901760, %v1271_v59  ;;  %v1289_v24 = vsub.f32 %v3219_v1, %v1288_v11  ;;  %v2379_v42 = vpack.c.bf16 %v3156_v41, %v3152_v39 }
 0x1b4   : > { %v2367_v36 = vpack.c.bf16 %v1266_v19, %v1260_v18  ;;  %v1278_v15 = vand.u32 4294901760, %v1277_v22  ;;  %v1284_v27 = vand.u32 4294901760, %v1283_v31  ;;  %v2383_v44 = vpack.c.bf16 %v3173_v45, %v3143_v32 }
 0x1b5   : > { %v1290_v33 = vand.u32 4294901760, %v1289_v24  ;;  %v2387_v46 = vpack.c.bf16 %v3189_v54, %v3183_v50  ;;  %v2391_v49 = vpack.c.bf16 %v3219_v1, %v3217_v0  ;;  %v2411_v53 = vpack.c.bf16 %v1252_v51, %v1246_v47 }
 0x1b6   : > { %2362 = vmatpush3.bf16.msk.msra.mxu1 %vm3233_vm15, %v2724_v38  ;;  %v2371_v26 = vpack.c.bf16 %v1278_v15, %v1272_v40 }
 0x1b7   : > { %2364 = vmatprep.subr.bf16.mxu1 %v2363_v13  ;;  %v2375_v37 = vpack.c.bf16 %v1290_v33, %v1284_v27 }
 0x1b9   : > { %2184 = vmatmul.mubr.f32.vlgmr.msra.gmra.mrb[0].mxu1 %v1218_v10 }
 0x1ba   : > { %2366 = vmatpush3.bf16.msra.mxu1 %v2363_v13  ;;  %2186 = vmatprep.mubr.f32.mxu1 %v1228_v23 }
 0x1bb   : > { %2368 = vmatprep.subr.bf16.mxu1 %v2367_v36 }
 0x1bd   : > { %2187 = vmatmul.mubr.f32.gmra.mrb[2].mxu1 %v1238_v34 }
 0x1be   : > { %2370 = vmatpush3.bf16.msra.mxu1 %v2367_v36  ;;  %2205 = vmatprep.mubr.f32.mxu1 %v3071_v16 }
 0x1bf   : > { %2372 = vmatprep.subr.bf16.mxu1 %v2371_v26 }
 0x1c2   : > { %2374 = vmatpush3.bf16.msra.mxu1 %v2371_v26 }
 0x1c3   : > { %2376 = vmatprep.subr.bf16.mxu1 %v2375_v37 }
 0x1c6   : > { %2378 = vmatpush3.bf16.msra.mxu1 %v2375_v37 }
 0x1c7   : > { %2380 = vmatprep.subr.bf16.mxu1 %v2379_v42 }
 0x1c9   : > { %2206 = vmatmul.mubr.f32.vlgmr.msra.gmra.mrb[0].mxu1 %v3118_v30 }
 0x1ca   : > { %2382 = vmatpush3.bf16.msra.mxu1 %v2379_v42  ;;  %2208 = vmatprep.mubr.f32.mxu1 %v3127_v14 }
 0x1cb   : > { %2384 = vmatprep.subr.bf16.mxu1 %v2383_v44 }
 0x1cd   : > { %2209 = vmatmul.mubr.f32.gmra.mrb[2].mxu1 %v3139_v29 }
 0x1ce   : > { %2386 = vmatpush3.bf16.msra.mxu1 %v2383_v44  ;;  %2227 = vmatprep.mubr.f32.mxu1 %v3074_v20  ;;  %v2415_v20 = vpack.c.bf16 %v1264_v56, %v1258_v52 }
 0x1cf   : > { %2388 = vmatprep.subr.bf16.mxu1 %v2387_v46 }
 0x1d2   : > { %2390 = vmatpush3.bf16.msra.mxu1 %v2387_v46 }
 0x1d3   : > { %2392 = vmatprep.subr.bf16.mxu1 %v2391_v49 }
 0x1d6   : > { %2394 = vmatpush3.bf16.msra.mxu1 %v2391_v49 }
 0x1d7   : > { %2396 = vmatprep.subr.msk.bf16.mxu1 %vm3145_vm9, %v2724_v38 }
 0x1d9   : > { %2228 = vmatmul.mubr.f32.vlgmr.msra.gmra.mrb[0].mxu1 %v3125_v17  ;;  %v2423_v17 = vpack.c.bf16 %v1288_v11, %v1282_v60 }
 0x1da   : > { %2398 = vmatpush3.bf16.msk.msra.mxu1 %vm3145_vm9, %v2724_v38  ;;  %2230 = vmatprep.mubr.f32.mxu1 %v3137_v28 }
 0x1db   : > { %2400 = vmatprep.subr.msk.bf16.mxu1 %vm3163_vm12, %v2724_v38 }
 0x1dd   : > { %2231 = vmatmul.mubr.f32.gmra.mrb[2].mxu1 %v3179_v48 }
 0x1de   : > { %2402 = vmatpush3.bf16.msk.msra.mxu1 %vm3163_vm12, %v2724_v38  ;;  %2249 = vmatprep.mubr.f32.mxu1 %v1206_v21  ;;  %v2419_v21 = vpack.c.bf16 %v1276_v7, %v1270_v3 }
 0x1df   : > { %2404 = vmatprep.subr.msk.bf16.mxu1 %vm3202_vm14, %v2724_v38 }
 0x1e2   : > { %2406 = vmatpush3.bf16.msk.msra.mxu1 %vm3202_vm14, %v2724_v38 }
 0x1e3   : > { %2408 = vmatprep.subr.msk.bf16.mxu1 %vm3233_vm15, %v2724_v38 }
 0x1e6   : > { %2410 = vmatpush3.bf16.msk.msra.mxu1 %vm3233_vm15, %v2724_v38 }
 0x1e7   : > { %2412 = vmatprep.subr.bf16.mxu1 %v2411_v53 }
 0x1e9   : > { %2250 = vmatmul.mubr.f32.vlgmr.msra.gmra.mrb[0].mxu1 %v1216_v25 }
 0x1ea   : > { %2414 = vmatpush3.bf16.msra.mxu1 %v2411_v53  ;;  %2252 = vmatprep.mubr.f32.mxu1 %v1226_v63 }
 0x1eb   : > { %2416 = vmatprep.subr.bf16.mxu1 %v2415_v20 }
 0x1ed   : > { %2253 = vmatmul.mubr.f32.gmra.mrb[2].mxu1 %v1236_v58 }
 0x1ee   : > { %2418 = vmatpush3.bf16.msra.mxu1 %v2415_v20  ;;  %2271 = vmatprep.mubr.f32.mxu1 %v3071_v16 }
 0x1ef   : > { %2420 = vmatprep.subr.bf16.mxu1 %v2419_v21 }
 0x1f2   : > { %2422 = vmatpush3.bf16.msra.mxu1 %v2419_v21 }
 0x1f3   : > { %2424 = vmatprep.subr.bf16.mxu1 %v2423_v17 }
 0x1f6   : > { %2426 = vmatpush3.bf16.msra.mxu1 %v2423_v17 }
 0x1f7   : > { %2428 = vmatprep.subr.msk.bf16.mxu1 %vm3145_vm9, %v2724_v38 }
 0x1f9   : > { %2272 = vmatmul.mubr.f32.vlgmr.msra.gmra.mrb[0].mxu1 %v3118_v30 }
 0x1fa   : > { %2430 = vmatpush3.bf16.msk.msra.mxu1 %vm3145_vm9, %v2724_v38  ;;  %2274 = vmatprep.mubr.f32.mxu1 %v3127_v14 }
 0x1fb   : > { %2432 = vmatprep.subr.msk.bf16.mxu1 %vm3163_vm12, %v2724_v38 }
 0x1fd   : > { %2275 = vmatmul.mubr.f32.gmra.mrb[2].mxu1 %v3139_v29 }
 0x1fe   : > { %2434 = vmatpush3.bf16.msk.msra.mxu1 %vm3163_vm12, %v2724_v38  ;;  %2293 = vmatprep.mubr.f32.mxu1 %v3071_v16 }
 0x1ff   : > { %2436 = vmatprep.subr.msk.bf16.mxu1 %vm3202_vm14, %v2724_v38 }
 0x202   : > { %2438 = vmatpush3.bf16.msk.msra.mxu1 %vm3202_vm14, %v2724_v38 }
 0x203   : > { %2440 = vmatprep.subr.msk.bf16.mxu1 %vm3233_vm15, %v2724_v38 }
 0x206   : > { %2442 = vmatpush3.bf16.msk.msra.mxu1 %vm3233_vm15, %v2724_v38 }
 0x209   : > { %2294 = vmatmul.mubr.f32.vlgmr.msra.gmra.mrb[0].mxu1 %v3118_v30 }
 0x20a   : > { %2296 = vmatprep.mubr.f32.mxu1 %v3127_v14 }
 0x20d   : > { %2297 = vmatmul.mubr.f32.gmra.mrb[2].mxu1 %v3139_v29 }
 0x2dc   : > { %v2295_v16 = vpop.f32.mrb[0].mxu1 }
 0x2dd   : > { %1758 = vst [vmem:[%s205_s11 + $0x8] sm:$0xff] %v2295_v16  ;;  %v1735_v25 = vpop.f32.mrb[1].mxu1 }
 0x2de   : > { %1757 = vst [vmem:[%s205_s11] sm:$0xff] %v1735_v25 }
 0x2e0   : > { %v2298_v30 = vpop.f32.mrb[2].mxu1 }
 0x2e1   : > { %1760 = vst [vmem:[%s205_s11 + $0x18] sm:$0xff] %v2298_v30  ;;  %v1747_v14 = vpop.f32.mrb[3].mxu1 }
 0x2e2   : > { %1759 = vst [vmem:[%s205_s11 + $0x10] sm:$0xff] %v1747_v14 }
 0x2e3   : > { %2632 = shalt.err (!%p2629_p4)
}
 0x2e4   : > { %s2633_s30 = scalar_lea.hbm %s3371_s16, 512  ;;  %s2637_s9 = scalar_lea.hbm %s3428_s3, 2048 }
 0x2e5   : > { %p2634_p3 = scmp.ne.s32.totalorder %s3371_s16, %s2633_s30  ;;  %p2638_p2 = scmp.lt.u32.totalorder %s3371_s16, %s3428_s3 }
 0x2e6   : > { %p2639_p5 = scmp.lt.u32.totalorder %s2637_s9, %s2633_s30  ;;  %p2641_p8 = scmp.lt.u32.totalorder %s2633_s30, %s3371_s16 }
 0x2e7   : > { %p2635_p6 = pnand %p2634_p3, %p3445_p9 }
 0x2e8   : > { %p2640_p10 = por %p2639_p5, %p2638_p2 }
 0x2e9   : > { %p2636_p7 = pneg %p2635_p6 }
 0x2ea   : > { %p2642_p12 = por %p2641_p8, %p2640_p10 }
 0x2ec   : > { %p2643_p0 = pnand %p2642_p12, %p2636_p7 }
 0x2ee   : > { %2646 = shalt.err (!%p2643_p0)
}
 0x2ef   : > { %s2726_s24 = smov 128   ;;  %s2727_s29 = smov 256  }
 0x2f0   : > { %s2728_s27 = smov 8  }
 0x2f1   : > { %2505 = dma.vmem_to_hbm [thread:$0]  (%p3445_p9), %s3366_s25, 512, %s3371_s16, %s1762_s15, %s2726_s24, %s2727_s29, %s2728_s27  }
 0x2f2 PF: > { %p2516_p11 = scmp.ge.s32.totalorder %s2717_s19, 2  ;;  %s1791_s8 = sand.u32 1, %s2689_s12  }
 0x2f3   : > { %p3446_p13 = scmp.ne.s32.totalorder %s3435_s4, 0  ;;  %s1792_s10 = scalar_lea.sflag [#allocation5], %s1791_s8 }
 0x2f5   : > { %p2512_p1 = pnand %p2516_p11, %p3446_p13 }
 0x2f7   : > { %2684 = dma.done.wait (!%p2512_p1), %s1792_s10, 512  }
 0x2f8   : > { %2686 = vsyncadd (!%p2512_p1), %s1792_s10, 4294966784  ;;  %s19_s19 = sadd.s32 1, %s2717_s19   ;;  %s3447_s28 = sld [smem:[#allocation9_spill]] }
 0x2f9   : > { %p16_p4 = scmp.ge.s32.totalorder %s19_s19, 6   ;;  %s3448_s12 = smov %s2693_s13 }
 0x2fa   : > { %s3449_s13 = smov %s2697_s14  ;;  %s3450_s14 = smov %s2827_s6 }
 0x2fb   : > { %s3451_s15 = smov %s2709_s17  ;;  %s3452_s16 = smov %s2713_s18 }
 0x2fc   : > { %s3453_s17 = smov %s3456_s22  ;;  %18 = sbr.rel (!%p16_p4) target bundleno = 7 (0x7), region = 77 }
 0x2fe   : > { %s3454_s18 = smov %s3447_s28 }
 0x303   :  { %1797 = vsyncpa [#allocation4], 1 }
 0x304   :  { %1799 = vsyncpa [#allocation4 + $0x1], 1 }
 0x305   :  { %1800 = vsyncpa [#allocation5], 1 }
 0x306   :  { %1802 = vsyncpa [#allocation5 + $0x1], 1 }

</bundles_post_ra>
